<compile_context>
chip_gen: v6e
topology: v6e:2x2x1
jax: 0.10.0
libtpu: 0.0.40
codegen_flags: <defaults>
</compile_context>

<pallas_src>
import functools

import jax
import jax.numpy as jnp
from jax import lax
from jax.experimental import pallas as pl
from jax.experimental.pallas import tpu as pltpu


# ----------------------------------------------------------------------------
# Pallas kernel: one denoising stage on a tile of patches (feature-major layout).
# ----------------------------------------------------------------------------
def _stage_kernel(T, H1, min_v, max_v, lam_nonneg, mm_dtype,
                  inv_c_ref, b4_ref,
                  u_ref,
                  wd_ref, b1_ref, w2t_ref, b2_ref, w3t_ref, b3_ref, w4_ref,
                  dict_ref, s_t_ref,
                  out_ref):
    inv_c = inv_c_ref[0, 0]
    b4 = b4_ref[0, 0]

    u = u_ref[...]                                               # (d, TM), f32
    u_mm = u.astype(mm_dtype)

    # Stacked first MLP layer + dictionary analysis: one (H1+L, d) @ (d, TM)
    # matmul instead of two tiny-M matmuls that each reload a stationary LHS.
    hu = jnp.dot(wd_ref[...], u_mm, preferred_element_type=jnp.float32)
    h = jnp.maximum(hu[:H1] + b1_ref[...], 0.0)                  # (H1, TM)
    y = hu[H1:]                                                  # (L, TM)

    h = jnp.maximum(
        jnp.dot(w2t_ref[...], h.astype(mm_dtype),
                preferred_element_type=jnp.float32) + b2_ref[...], 0.0)
    h = jnp.maximum(
        jnp.dot(w3t_ref[...], h.astype(mm_dtype),
                preferred_element_type=jnp.float32) + b3_ref[...], 0.0)
    # Last layer has a single output unit: VPU mul + sublane reduce, not MXU.
    lam = jnp.sum(h * w4_ref[...], axis=0, keepdims=True) + b4   # (1, TM)
    l = lam * inv_c

    y_scaled = y * inv_c
    # Hoist the threshold broadcast out of the unrolled T loop (JAX does not
    # CSE broadcast_in_dim; the loop body is inlined T+1 times).
    l_b = jnp.broadcast_to(l, y.shape)                           # (L, TM)

    if lam_nonneg:
        neg_l_b = -l_b

        def soft_thresh(v):
            # Valid for l >= 0: sign(v)*max(|v|-l,0) == v - clip(v,-l,l).
            return v - jnp.clip(v, neg_l_b, l_b)
    else:
        def soft_thresh(v):
            return jnp.sign(v) * jnp.maximum(jnp.abs(v) - l_b, 0.0)

    z = soft_thresh(y)
    for _ in range(T):                                           # static unroll, T small
        z = soft_thresh(
            jnp.dot(s_t_ref[...], z.astype(mm_dtype),
                    preferred_element_type=jnp.float32) + y_scaled)

    x_pred = jnp.dot(dict_ref[...], z.astype(mm_dtype),
                     preferred_element_type=jnp.float32)         # (d, TM)
    # No w_stage scale here: it cancels exactly against the fold normalizer.
    out_ref[...] = jnp.clip(x_pred, min_v, max_v).astype(out_ref.dtype)


def _round_up(x, m):
    return ((x + m - 1) // m) * m


def run_stage(patches_t, mlp, Dict, S_t, inv_c, T, min_v, max_v, *,
              tile_m=8192, mm_dtype=jnp.bfloat16, lam_nonneg=False):
    """patches_t: (d, M) feature-major patches -> (d, M) clipped patch predictions."""
    d, M = patches_t.shape
    w1, b1, w2, b2, w3, b3, w4, b4 = mlp
    H1 = w1.shape[1]

    # Tile choice: lane-aligned, as large as requested, with an EVEN number of
    # grid steps so v7x's two TensorCores split the "parallel" axis evenly.
    steps = max(2, _round_up(max(1, -(-M // int(tile_m))), 2))
    tm = max(128, _round_up(-(-M // steps), 128))
    M_pad = steps * tm
    patches_p = jnp.pad(patches_t, ((0, 0), (0, M_pad - M)))

    # Pre-transpose / pre-cast on the host: no in-kernel transposes, MXU
    # operands in bf16 (f32 accumulation in-kernel).
    wd = jnp.concatenate([w1.T, Dict.T], axis=0).astype(mm_dtype)   # (H1+L, d)
    w2t = w2.T.astype(mm_dtype)
    w3t = w3.T.astype(mm_dtype)
    dict_mm = Dict.astype(mm_dtype)                                 # (d, L)
    s_t_mm = S_t.astype(mm_dtype)                                   # (L, L)
    b1c = b1.reshape(-1, 1).astype(jnp.float32)
    b2c = b2.reshape(-1, 1).astype(jnp.float32)
    b3c = b3.reshape(-1, 1).astype(jnp.float32)
    assert w4.shape[-1] == 1, "D_out_lam must be 1"
    w4c = w4.reshape(-1, 1).astype(jnp.float32)                     # stays on VPU
    b4s = jnp.asarray(b4, jnp.float32).reshape(1, 1)

    def const_spec(a):
        nd = a.ndim
        return pl.BlockSpec(a.shape, lambda i, _nd=nd: (0,) * _nd)

    kernel = functools.partial(_stage_kernel, int(T), int(H1), float(min_v),
                               float(max_v), bool(lam_nonneg), mm_dtype)

    out = pl.pallas_call(
        kernel,
        out_shape=jax.ShapeDtypeStruct((d, M_pad), jnp.float32),
        grid=(M_pad // tm,),
        in_specs=[
            pl.BlockSpec(memory_space=pltpu.MemorySpace.SMEM),   # inv_c (1,1)
            pl.BlockSpec(memory_space=pltpu.MemorySpace.SMEM),   # b4    (1,1)
            pl.BlockSpec((d, tm), lambda i: (0, i)),             # patch tile
            const_spec(wd), const_spec(b1c),
            const_spec(w2t), const_spec(b2c),
            const_spec(w3t), const_spec(b3c),
            const_spec(w4c),
            const_spec(dict_mm), const_spec(s_t_mm),
        ],
        out_specs=pl.BlockSpec((d, tm), lambda i: (0, i)),
        compiler_params=pltpu.CompilerParams(
            dimension_semantics=("parallel",),
            vmem_limit_bytes=48 * 1024 * 1024),
    )(jnp.asarray(inv_c, jnp.float32).reshape(1, 1), b4s, patches_p,
      wd, b1c, w2t, b2c, w3t, b3c, w4c, dict_mm, s_t_mm)
    return out[:, :M]


# ----------------------------------------------------------------------------
# Glue: unfold / fold as single grouped convs with identity patch kernels.
# Channel ordering matches torch.nn.Unfold: (C, ki, kj) flattened.
# ----------------------------------------------------------------------------
def _make_patch_kernels(p, C, dtype=jnp.float32):
    eye = jnp.eye(p * p, dtype=dtype).reshape(p * p, p, p)        # eye[s,ki,kj]=(s==ki*p+kj)
    unfold_k = jnp.tile(eye[:, None], (C, 1, 1, 1))               # (C*p*p, 1, p, p)
    fold_k = jnp.tile(jnp.flip(eye, (1, 2))[None], (C, 1, 1, 1))  # (C, p*p, p, p)
    return unfold_k, fold_k


def unfold_to_dM(x, unfold_k, C):
    """(N,C,H,W) -> (d, N*oh*ow) feature-major patch matrix (patches on lanes)."""
    cols = lax.conv_general_dilated(
        x, unfold_k, window_strides=(1, 1), padding='VALID',
        dimension_numbers=('NCHW', 'OIHW', 'CNHW'), feature_group_count=C)
    d, N, oh, ow = cols.shape
    return cols.reshape(d, N * oh * ow), (N, oh, ow)


def fold_from_dM(cols_dM, fold_k, C, p, N, oh, ow):
    """(d, N*oh*ow) -> (N, C, H, W) overlap-add (transpose of unfold)."""
    lhs = cols_dM.reshape(-1, N, oh, ow)
    return lax.conv_general_dilated(
        lhs, fold_k, window_strides=(1, 1),
        padding=[(p - 1, p - 1), (p - 1, p - 1)],
        dimension_numbers=('CNHW', 'OIHW', 'NCHW'), feature_group_count=C)


# ----------------------------------------------------------------------------
# Full forward (3 stages).
# ----------------------------------------------------------------------------
def denoising_net_mlp_3(x, params, *, patch_size, T, min_v, max_v,
                        tile_m=8192, mm_dtype=jnp.bfloat16,
                        assume_lam_nonneg=False):
    N, C, H, W = x.shape
    p = patch_size
    d = C * p * p
    oh, ow = H - p + 1, W - p + 1

    Dict = params["Dict"]                                         # (d, L)
    c = params["c"]
    L = Dict.shape[1]
    inv_c = 1.0 / c
    # Exactly as in the torch forward: S = (I - 1/c * D^T D)^T.  The kernel works
    # in the transposed layout, so it left-multiplies with S^T.
    S = (jnp.eye(L, dtype=jnp.float32) - inv_c * (Dict.T @ Dict)).T
    S_t = S.T

    unfold_k, fold_k = _make_patch_kernels(p, C, x.dtype)
    # Stage-invariant overlap counts: fold(w*xp)/fold(w*ones) == fold(xp)/count,
    # so the per-stage weight cancels and one count suffices for all stages.
    count = fold_from_dM(jnp.ones((d, oh * ow), x.dtype), fold_k, C, p, 1, oh, ow)

    res = x
    for s_idx in range(3):
        patches_t, _ = unfold_to_dM(res, unfold_k, C)             # (d, N*P)
        xp_t = run_stage(patches_t, params["mlp"][s_idx], Dict, S_t, inv_c,
                         T, min_v, max_v, tile_m=tile_m, mm_dtype=mm_dtype,
                         lam_nonneg=assume_lam_nonneg)
        fold = fold_from_dM(xp_t, fold_k, C, p, N, oh, ow)        # (N, C, H, W)
        res = fold / count
    return res


# ----------------------------------------------------------------------------
# Pure-JAX references (correctness checks only).
# ----------------------------------------------------------------------------
def _unfold_ref(x, p):
    N, C, H, W = x.shape
    oh, ow = H - p + 1, W - p + 1
    cols = []
    for ch in range(C):
        for ki in range(p):
            for kj in range(p):
                cols.append(x[:, ch, ki:ki + oh, kj:kj + ow].reshape(N, oh * ow))
    return jnp.stack(cols, axis=1)                                # (N, C*p*p, P)


def _fold_ref(cols, out_hw, p, C):
    N = cols.shape[0]
    H, W = out_hw
    oh, ow = H - p + 1, W - p + 1
    out = jnp.zeros((N, C, H, W), cols.dtype)
    idx = 0
    for ch in range(C):
        for ki in range(p):
            for kj in range(p):
                out = out.at[:, ch, ki:ki + oh, kj:kj + ow].add(
                    cols[:, idx].reshape(N, oh, ow))
                idx += 1
    return out


def _stage_ref(patches, mlp, Dict, S, c, T, min_v, max_v):
    w1, b1, w2, b2, w3, b3, w4, b4 = mlp
    h = jnp.maximum(patches @ w1 + b1, 0.0)
    h = jnp.maximum(h @ w2 + b2, 0.0)
    h = jnp.maximum(h @ w3 + b3, 0.0)
    lam = h @ w4 + b4
    l = lam / c
    y = patches @ Dict
    soft = lambda v: jnp.sign(v) * jnp.maximum(jnp.abs(v) - l, 0.0)
    z = soft(y)
    for _ in range(T):
        z = soft(z @ S + y / c)
    return jnp.clip(z @ Dict.T, min_v, max_v)


def _forward_ref(x, params, *, patch_size, T, min_v, max_v):
    N, C, H, W = x.shape
    p = patch_size
    d = C * p * p
    Dict = params["Dict"]
    c = params["c"]
    L = Dict.shape[1]
    S = (jnp.eye(L, dtype=jnp.float32) - (1.0 / c) * (Dict.T @ Dict)).T
    res = x
    for s_idx in range(3):
        cols = _unfold_ref(res, p)
        patches = cols.transpose(0, 2, 1).reshape(-1, d)
        w_s = params["w"][s_idx]
        xp = w_s * _stage_ref(patches, params["mlp"][s_idx], Dict, S, c, T,
                              min_v, max_v)
        xp_cols = xp.reshape(N, -1, d).transpose(0, 2, 1)
        fold = _fold_ref(xp_cols, (H, W), p, C)
        norm = _fold_ref(w_s * jnp.ones_like(xp_cols), (H, W), p, C)
        res = fold / norm
    return res


# ----------------------------------------------------------------------------
# Deterministic parameter construction + demo.
# ----------------------------------------------------------------------------
def make_params(key, D_in, H1, H2, H3, D_out, L):
    keys = jax.random.split(key, 32)
    ki = iter(keys)

    def lin(shape, scale):
        return scale * jax.random.normal(next(ki), shape, jnp.float32)

    Dict = jax.random.normal(next(ki), (D_in, L), jnp.float32)
    Dict = Dict / jnp.linalg.norm(Dict, axis=0, keepdims=True)    # unit-norm atoms
    c = jnp.array(5.0, jnp.float32)

    def mlp_stage():
        # Last-layer weights kept nonnegative so lambda (the soft threshold) is
        # positive, as in a trained Deep-KSVD model.
        return (lin((D_in, H1), 0.2), lin((1, H1), 0.05),
                lin((H1, H2), 0.2), lin((1, H2), 0.05),
                lin((H2, H3), 0.2), lin((1, H3), 0.05),
                jnp.abs(lin((H3, D_out), 0.05)), 0.1 + jnp.abs(lin((1, D_out), 0.05)))

    return {
        "Dict": Dict,
        "c": c,
        "mlp": [mlp_stage(), mlp_stage(), mlp_stage()],
        "w": [jnp.array(0.5, jnp.float32),
              jnp.array(0.8, jnp.float32),
              jnp.array(1.2, jnp.float32)],
    }


if __name__ == "__main__":
    patch_size = 4
    N, C, H, W = 2, 1, 16, 16
    D_in = C * patch_size * patch_size          # 16
    H1, H2, H3, D_out_lam, L = 32, 32, 16, 1, 32
    T = 3
    min_v, max_v = -1.0, 1.0

    key = jax.random.PRNGKey(0)
    kx, kp = jax.random.split(key)
    x = jax.random.normal(kx, (N, C, H, W), jnp.float32)
    params = make_params(kp, D_in, H1, H2, H3, D_out_lam, L)

    # Main (optimized) path: bf16 MXU operands, clip-form soft-threshold
    # (lambda >= 0 is guaranteed by make_params / trained Deep-KSVD models).
    fwd = jax.jit(functools.partial(denoising_net_mlp_3, patch_size=patch_size,
                                    T=T, min_v=min_v, max_v=max_v,
                                    tile_m=8192, mm_dtype=jnp.bfloat16,
                                    assume_lam_nonneg=True))
    res = jax.block_until_ready(fwd(x, params))
    assert res.shape == (N, C, H, W)
    assert bool(jnp.all(jnp.isfinite(res)))

    # --- correctness checks against pure-JAX references ---------------------
    # conv-based unfold matches the explicit loop unfold (channel ordering)
    unfold_k, fold_k = _make_patch_kernels(patch_size, C, jnp.float32)
    patches_t, _ = unfold_to_dM(x, unfold_k, C)
    patches_ref = _unfold_ref(x, patch_size).transpose(1, 0, 2).reshape(D_in, -1)
    assert jnp.allclose(patches_t, patches_ref, atol=1e-6), "unfold mismatch"

    # single Pallas stage (exact f32 path, generic sign/abs soft-threshold)
    # vs pure-JAX stage — tight tolerance.
    Dict = params["Dict"]
    c = params["c"]
    S = (jnp.eye(L, dtype=jnp.float32) - (1.0 / c) * (Dict.T @ Dict)).T
    got = run_stage(patches_t, params["mlp"][0], Dict, S.T, 1.0 / c,
                    T, min_v, max_v, mm_dtype=jnp.float32, lam_nonneg=False)
    want = _stage_ref(patches_t.T, params["mlp"][0], Dict, S, c, T, min_v, max_v)
    assert jnp.allclose(got.T, want, atol=2e-4, rtol=2e-4), \
        "stage mismatch vs JAX reference (f32 path)"

    # full 3-stage forward, exact f32 kernel path — tight tolerance.
    fwd_f32 = jax.jit(functools.partial(denoising_net_mlp_3, patch_size=patch_size,
                                        T=T, min_v=min_v, max_v=max_v,
                                        tile_m=8192, mm_dtype=jnp.float32,
                                        assume_lam_nonneg=True))
    res_f32 = jax.block_until_ready(fwd_f32(x, params))
    want_full = _forward_ref(x, params, patch_size=patch_size, T=T,
                             min_v=min_v, max_v=max_v)
    assert jnp.allclose(res_f32, want_full, atol=1e-3, rtol=1e-3), \
        "forward mismatch vs JAX reference (f32 path)"

    # bf16-operand path sanity check vs the f32 reference (loose tolerance:
    # bf16 input quantization is amplified over the T soft-threshold steps).
    assert jnp.allclose(res, want_full, atol=1e-1, rtol=1e-1), \
        "forward mismatch vs JAX reference (bf16 path, loose)"

    print("KERNEL_OK")
</pallas_src>

<mosaic_0001>
module attributes {stable_mosaic.version = 11 : i64} {
  func.func @_stage_kernel(%arg0: i32, %arg1: memref<1x1xf32, #tpu.memory_space<smem>>, %arg2: memref<1x1xf32, #tpu.memory_space<smem>>, %arg3: memref<16x256xf32, #tpu.memory_space<vmem>>, %arg4: memref<64x16xbf16, #tpu.memory_space<vmem>>, %arg5: memref<32x1xf32, #tpu.memory_space<vmem>>, %arg6: memref<32x32xbf16, #tpu.memory_space<vmem>>, %arg7: memref<32x1xf32, #tpu.memory_space<vmem>>, %arg8: memref<16x32xbf16, #tpu.memory_space<vmem>>, %arg9: memref<16x1xf32, #tpu.memory_space<vmem>>, %arg10: memref<16x1xf32, #tpu.memory_space<vmem>>, %arg11: memref<16x32xbf16, #tpu.memory_space<vmem>>, %arg12: memref<32x32xbf16, #tpu.memory_space<vmem>>, %arg13: memref<16x256xf32, #tpu.memory_space<vmem>>) attributes {dimension_semantics = [#tpu.dimension_semantics<parallel>], iteration_bounds = array<i64: 2>, scalar_prefetch = 0 : i64, scratch_operands = 0 : i64, tpu.core_type = #tpu.core_type<tc>, window_params = [{transform_indices = @transform_0, window_bounds = array<i64: 1, 1>}, {transform_indices = @transform_1, window_bounds = array<i64: 1, 1>}, {transform_indices = @transform_2, window_bounds = array<i64: 16, 256>}, {pipeline_mode = #tpu.pipeline_mode<synchronous>, transform_indices = @transform_3, window_bounds = array<i64: 64, 16>}, {pipeline_mode = #tpu.pipeline_mode<synchronous>, transform_indices = @transform_4, window_bounds = array<i64: 32, 1>}, {pipeline_mode = #tpu.pipeline_mode<synchronous>, transform_indices = @transform_5, window_bounds = array<i64: 32, 32>}, {pipeline_mode = #tpu.pipeline_mode<synchronous>, transform_indices = @transform_6, window_bounds = array<i64: 32, 1>}, {pipeline_mode = #tpu.pipeline_mode<synchronous>, transform_indices = @transform_7, window_bounds = array<i64: 16, 32>}, {pipeline_mode = #tpu.pipeline_mode<synchronous>, transform_indices = @transform_8, window_bounds = array<i64: 16, 1>}, {pipeline_mode = #tpu.pipeline_mode<synchronous>, transform_indices = @transform_9, window_bounds = array<i64: 16, 1>}, {pipeline_mode = #tpu.pipeline_mode<synchronous>, transform_indices = @transform_10, window_bounds = array<i64: 16, 32>}, {pipeline_mode = #tpu.pipeline_mode<synchronous>, transform_indices = @transform_11, window_bounds = array<i64: 32, 32>}, {transform_indices = @transform_12, window_bounds = array<i64: 16, 256>}]} {
    %c0 = arith.constant 0 : index
    %c0_0 = arith.constant 0 : index
    %0 = memref.load %arg1[%c0, %c0_0] : memref<1x1xf32, #tpu.memory_space<smem>>
    %c0_1 = arith.constant 0 : index
    %c0_2 = arith.constant 0 : index
    %1 = memref.load %arg2[%c0_1, %c0_2] : memref<1x1xf32, #tpu.memory_space<smem>>
    %c0_3 = arith.constant 0 : index
    %c0_4 = arith.constant 0 : index
    %2 = vector.load %arg3[%c0_3, %c0_4] : memref<16x256xf32, #tpu.memory_space<vmem>>, vector<16x256xf32>
    %3 = arith.truncf %2 : vector<16x256xf32> to vector<16x256xbf16>
    %c0_5 = arith.constant 0 : index
    %c0_6 = arith.constant 0 : index
    %4 = vector.load %arg4[%c0_5, %c0_6] : memref<64x16xbf16, #tpu.memory_space<vmem>>, vector<64x16xbf16>
    %cst = arith.constant dense<0.000000e+00> : vector<64x256xf32>
    %5 = tpu.matmul %4, %3, %cst {dimension_numbers = #tpu.dot_dimension_numbers<[1], [0], [0], [1], [0, 0, 1, 1], [], []>} : vector<64x16xbf16>, vector<16x256xbf16>, vector<64x256xf32> -> vector<64x256xf32>
    %6 = vector.extract_strided_slice %5 {offsets = [0, 0], sizes = [32, 256], strides = [1, 1]} : vector<64x256xf32> to vector<32x256xf32>
    %c0_7 = arith.constant 0 : index
    %c0_8 = arith.constant 0 : index
    %7 = vector.load %arg5[%c0_7, %c0_8] : memref<32x1xf32, #tpu.memory_space<vmem>>, vector<32x1xf32>
    %8 = vector.broadcast %7 : vector<32x1xf32> to vector<32x256xf32>
    %9 = arith.addf %6, %8 : vector<32x256xf32>
    %cst_9 = arith.constant 0.000000e+00 : f32
    %10 = vector.broadcast %cst_9 : f32 to vector<32x256xf32>
    %11 = arith.maximumf %9, %10 : vector<32x256xf32>
    %12 = vector.extract_strided_slice %5 {offsets = [32, 0], sizes = [32, 256], strides = [1, 1]} : vector<64x256xf32> to vector<32x256xf32>
    %c0_10 = arith.constant 0 : index
    %c0_11 = arith.constant 0 : index
    %13 = vector.load %arg6[%c0_10, %c0_11] : memref<32x32xbf16, #tpu.memory_space<vmem>>, vector<32x32xbf16>
    %14 = arith.truncf %11 : vector<32x256xf32> to vector<32x256xbf16>
    %cst_12 = arith.constant dense<0.000000e+00> : vector<32x256xf32>
    %15 = tpu.matmul %13, %14, %cst_12 {dimension_numbers = #tpu.dot_dimension_numbers<[1], [0], [0], [1], [0, 0, 1, 1], [], []>} : vector<32x32xbf16>, vector<32x256xbf16>, vector<32x256xf32> -> vector<32x256xf32>
    %c0_13 = arith.constant 0 : index
    %c0_14 = arith.constant 0 : index
    %16 = vector.load %arg7[%c0_13, %c0_14] : memref<32x1xf32, #tpu.memory_space<vmem>>, vector<32x1xf32>
    %17 = vector.broadcast %16 : vector<32x1xf32> to vector<32x256xf32>
    %18 = arith.addf %15, %17 : vector<32x256xf32>
    %cst_15 = arith.constant 0.000000e+00 : f32
    %19 = vector.broadcast %cst_15 : f32 to vector<32x256xf32>
    %20 = arith.maximumf %18, %19 : vector<32x256xf32>
    %c0_16 = arith.constant 0 : index
    %c0_17 = arith.constant 0 : index
    %21 = vector.load %arg8[%c0_16, %c0_17] : memref<16x32xbf16, #tpu.memory_space<vmem>>, vector<16x32xbf16>
    %22 = arith.truncf %20 : vector<32x256xf32> to vector<32x256xbf16>
    %cst_18 = arith.constant dense<0.000000e+00> : vector<16x256xf32>
    %23 = tpu.matmul %21, %22, %cst_18 {dimension_numbers = #tpu.dot_dimension_numbers<[1], [0], [0], [1], [0, 0, 1, 1], [], []>} : vector<16x32xbf16>, vector<32x256xbf16>, vector<16x256xf32> -> vector<16x256xf32>
    %c0_19 = arith.constant 0 : index
    %c0_20 = arith.constant 0 : index
    %24 = vector.load %arg9[%c0_19, %c0_20] : memref<16x1xf32, #tpu.memory_space<vmem>>, vector<16x1xf32>
    %25 = vector.broadcast %24 : vector<16x1xf32> to vector<16x256xf32>
    %26 = arith.addf %23, %25 : vector<16x256xf32>
    %cst_21 = arith.constant 0.000000e+00 : f32
    %27 = vector.broadcast %cst_21 : f32 to vector<16x256xf32>
    %28 = arith.maximumf %26, %27 : vector<16x256xf32>
    %c0_22 = arith.constant 0 : index
    %c0_23 = arith.constant 0 : index
    %29 = vector.load %arg10[%c0_22, %c0_23] : memref<16x1xf32, #tpu.memory_space<vmem>>, vector<16x1xf32>
    %30 = vector.broadcast %29 : vector<16x1xf32> to vector<16x256xf32>
    %31 = arith.mulf %28, %30 : vector<16x256xf32>
    %cst_24 = arith.constant dense<0.000000e+00> : vector<256xf32>
    %32 = vector.multi_reduction <add>, %31, %cst_24 [0] : vector<16x256xf32> to vector<256xf32>
    %33 = vector.shape_cast %32 : vector<256xf32> to vector<1x256xf32>
    %34 = vector.broadcast %1 : f32 to vector<1x256xf32>
    %35 = arith.addf %33, %34 : vector<1x256xf32>
    %36 = vector.broadcast %0 : f32 to vector<1x256xf32>
    %37 = arith.mulf %35, %36 : vector<1x256xf32>
    %38 = vector.broadcast %0 : f32 to vector<32x256xf32>
    %39 = arith.mulf %12, %38 : vector<32x256xf32>
    %40 = vector.shape_cast %37 : vector<1x256xf32> to vector<1x256xf32>
    %41 = vector.broadcast %40 : vector<1x256xf32> to vector<32x256xf32>
    %cst_25 = arith.constant 0.000000e+00 : f32
    %42 = vector.broadcast %cst_25 : f32 to vector<32x256xf32>
    %43 = arith.subf %42, %41 : vector<32x256xf32>
    %44 = arith.maximumf %43, %12 : vector<32x256xf32>
    %45 = arith.minimumf %41, %44 : vector<32x256xf32>
    %46 = arith.subf %12, %45 : vector<32x256xf32>
    %c0_26 = arith.constant 0 : index
    %c0_27 = arith.constant 0 : index
    %47 = vector.load %arg12[%c0_26, %c0_27] : memref<32x32xbf16, #tpu.memory_space<vmem>>, vector<32x32xbf16>
    %48 = arith.truncf %46 : vector<32x256xf32> to vector<32x256xbf16>
    %cst_28 = arith.constant dense<0.000000e+00> : vector<32x256xf32>
    %49 = tpu.matmul %47, %48, %cst_28 {dimension_numbers = #tpu.dot_dimension_numbers<[1], [0], [0], [1], [0, 0, 1, 1], [], []>} : vector<32x32xbf16>, vector<32x256xbf16>, vector<32x256xf32> -> vector<32x256xf32>
    %50 = arith.addf %49, %39 : vector<32x256xf32>
    %51 = arith.maximumf %43, %50 : vector<32x256xf32>
    %52 = arith.minimumf %41, %51 : vector<32x256xf32>
    %53 = arith.subf %50, %52 : vector<32x256xf32>
    %c0_29 = arith.constant 0 : index
    %c0_30 = arith.constant 0 : index
    %54 = vector.load %arg12[%c0_29, %c0_30] : memref<32x32xbf16, #tpu.memory_space<vmem>>, vector<32x32xbf16>
    %55 = arith.truncf %53 : vector<32x256xf32> to vector<32x256xbf16>
    %cst_31 = arith.constant dense<0.000000e+00> : vector<32x256xf32>
    %56 = tpu.matmul %54, %55, %cst_31 {dimension_numbers = #tpu.dot_dimension_numbers<[1], [0], [0], [1], [0, 0, 1, 1], [], []>} : vector<32x32xbf16>, vector<32x256xbf16>, vector<32x256xf32> -> vector<32x256xf32>
    %57 = arith.addf %56, %39 : vector<32x256xf32>
    %58 = arith.maximumf %43, %57 : vector<32x256xf32>
    %59 = arith.minimumf %41, %58 : vector<32x256xf32>
    %60 = arith.subf %57, %59 : vector<32x256xf32>
    %c0_32 = arith.constant 0 : index
    %c0_33 = arith.constant 0 : index
    %61 = vector.load %arg12[%c0_32, %c0_33] : memref<32x32xbf16, #tpu.memory_space<vmem>>, vector<32x32xbf16>
    %62 = arith.truncf %60 : vector<32x256xf32> to vector<32x256xbf16>
    %cst_34 = arith.constant dense<0.000000e+00> : vector<32x256xf32>
    %63 = tpu.matmul %61, %62, %cst_34 {dimension_numbers = #tpu.dot_dimension_numbers<[1], [0], [0], [1], [0, 0, 1, 1], [], []>} : vector<32x32xbf16>, vector<32x256xbf16>, vector<32x256xf32> -> vector<32x256xf32>
    %64 = arith.addf %63, %39 : vector<32x256xf32>
    %65 = arith.maximumf %43, %64 : vector<32x256xf32>
    %66 = arith.minimumf %41, %65 : vector<32x256xf32>
    %67 = arith.subf %64, %66 : vector<32x256xf32>
    %c0_35 = arith.constant 0 : index
    %c0_36 = arith.constant 0 : index
    %68 = vector.load %arg11[%c0_35, %c0_36] : memref<16x32xbf16, #tpu.memory_space<vmem>>, vector<16x32xbf16>
    %69 = arith.truncf %67 : vector<32x256xf32> to vector<32x256xbf16>
    %cst_37 = arith.constant dense<0.000000e+00> : vector<16x256xf32>
    %70 = tpu.matmul %68, %69, %cst_37 {dimension_numbers = #tpu.dot_dimension_numbers<[1], [0], [0], [1], [0, 0, 1, 1], [], []>} : vector<16x32xbf16>, vector<32x256xbf16>, vector<16x256xf32> -> vector<16x256xf32>
    %cst_38 = arith.constant -1.000000e+00 : f32
    %cst_39 = arith.constant 1.000000e+00 : f32
    %71 = vector.broadcast %cst_38 : f32 to vector<16x256xf32>
    %72 = arith.maximumf %71, %70 : vector<16x256xf32>
    %73 = vector.broadcast %cst_39 : f32 to vector<16x256xf32>
    %74 = arith.minimumf %73, %72 : vector<16x256xf32>
    %c0_40 = arith.constant 0 : index
    %c0_41 = arith.constant 0 : index
    %75 = vector.load %arg13[%c0_40, %c0_41] : memref<16x256xf32, #tpu.memory_space<vmem>>, vector<16x256xf32>
    tpu.vector_store %arg13[%c0_40, %c0_41], %74 {strides = array<i32>} : memref<16x256xf32, #tpu.memory_space<vmem>>, vector<16x256xf32>,
    return
  }
  func.func @transform_0(%arg0: i32) -> (i32, i32) {
    %c0_i32 = arith.constant 0 : i32
    %c0_i32_0 = arith.constant 0 : i32
    %c0_i32_1 = arith.constant 0 : i32
    return %c0_i32, %c0_i32_0 : i32, i32
  }
  func.func @transform_1(%arg0: i32) -> (i32, i32) {
    %c0_i32 = arith.constant 0 : i32
    %c0_i32_0 = arith.constant 0 : i32
    %c0_i32_1 = arith.constant 0 : i32
    return %c0_i32, %c0_i32_0 : i32, i32
  }
  func.func @transform_2(%arg0: i32) -> (i32, i32) {
    %c0_i32 = arith.constant 0 : i32
    %c0_i32_0 = arith.constant 0 : i32
    return %c0_i32, %arg0 : i32, i32
  }
  func.func @transform_3(%arg0: i32) -> (i32, i32) {
    %c0_i32 = arith.constant 0 : i32
    %c0_i32_0 = arith.constant 0 : i32
    %c0_i32_1 = arith.constant 0 : i32
    return %c0_i32, %c0_i32_0 : i32, i32
  }
  func.func @transform_4(%arg0: i32) -> (i32, i32) {
    %c0_i32 = arith.constant 0 : i32
    %c0_i32_0 = arith.constant 0 : i32
    %c0_i32_1 = arith.constant 0 : i32
    return %c0_i32, %c0_i32_0 : i32, i32
  }
  func.func @transform_5(%arg0: i32) -> (i32, i32) {
    %c0_i32 = arith.constant 0 : i32
    %c0_i32_0 = arith.constant 0 : i32
    %c0_i32_1 = arith.constant 0 : i32
    return %c0_i32, %c0_i32_0 : i32, i32
  }
  func.func @transform_6(%arg0: i32) -> (i32, i32) {
    %c0_i32 = arith.constant 0 : i32
    %c0_i32_0 = arith.constant 0 : i32
    %c0_i32_1 = arith.constant 0 : i32
    return %c0_i32, %c0_i32_0 : i32, i32
  }
  func.func @transform_7(%arg0: i32) -> (i32, i32) {
    %c0_i32 = arith.constant 0 : i32
    %c0_i32_0 = arith.constant 0 : i32
    %c0_i32_1 = arith.constant 0 : i32
    return %c0_i32, %c0_i32_0 : i32, i32
  }
  func.func @transform_8(%arg0: i32) -> (i32, i32) {
    %c0_i32 = arith.constant 0 : i32
    %c0_i32_0 = arith.constant 0 : i32
    %c0_i32_1 = arith.constant 0 : i32
    return %c0_i32, %c0_i32_0 : i32, i32
  }
  func.func @transform_9(%arg0: i32) -> (i32, i32) {
    %c0_i32 = arith.constant 0 : i32
    %c0_i32_0 = arith.constant 0 : i32
    %c0_i32_1 = arith.constant 0 : i32
    return %c0_i32, %c0_i32_0 : i32, i32
  }
  func.func @transform_10(%arg0: i32) -> (i32, i32) {
    %c0_i32 = arith.constant 0 : i32
    %c0_i32_0 = arith.constant 0 : i32
    %c0_i32_1 = arith.constant 0 : i32
    return %c0_i32, %c0_i32_0 : i32, i32
  }
  func.func @transform_11(%arg0: i32) -> (i32, i32) {
    %c0_i32 = arith.constant 0 : i32
    %c0_i32_0 = arith.constant 0 : i32
    %c0_i32_1 = arith.constant 0 : i32
    return %c0_i32, %c0_i32_0 : i32, i32
  }
  func.func @transform_12(%arg0: i32) -> (i32, i32) {
    %c0_i32 = arith.constant 0 : i32
    %c0_i32_0 = arith.constant 0 : i32
    return %c0_i32, %arg0 : i32, i32
  }
}

</mosaic_0001>

<bundles_post_ra>
// kernel: denoising_net_mlp_3.3
= control target key start
LH: loop header
LB: loop body
LE: loop exit
PB: predicated region body
PF: predicated region fallthrough
CT: control target
= control target key end

     0   :  { %s1769_s0 = inlined_call_operand.<no memory space> [shape: f32[1,1], index: 0, kind: input, shape index: {}]   ;;  %s1770_s1 = inlined_call_operand.<no memory space> [shape: f32[1,1], index: 1, kind: input, shape index: {}]   ;;  %s1771_s2 = inlined_call_operand.vmem [shape: f32[16,512], index: 2, kind: input, shape index: {}]   ;;  %s1772_s3 = inlined_call_operand.vmem [shape: bf16[64,16], index: 3, kind: input, shape index: {}]   ;;  %s1773_s4 = inlined_call_operand.vmem [shape: f32[32,1], index: 4, kind: input, shape index: {}]   ;;  %s1774_s5 = inlined_call_operand.vmem [shape: bf16[32,32], index: 5, kind: input, shape index: {}]   ;;  %s1775_s6 = inlined_call_operand.vmem [shape: f32[32,1], index: 6, kind: input, shape index: {}]   ;;  %s1776_s7 = inlined_call_operand.vmem [shape: bf16[16,32], index: 7, kind: input, shape index: {}]   ;;  %s1777_s8 = inlined_call_operand.vmem [shape: f32[16,1], index: 8, kind: input, shape index: {}]   ;;  %s1778_s9 = inlined_call_operand.vmem [shape: f32[16,1], index: 9, kind: input, shape index: {}]   ;;  %s1779_s10 = inlined_call_operand.vmem [shape: bf16[16,32], index: 10, kind: input, shape index: {}]   ;;  %s1780_s11 = inlined_call_operand.vmem [shape: bf16[32,32], index: 11, kind: input, shape index: {}]   ;;  %s1781_s12 = inlined_call_operand.vmem [shape: f32[16,512], index: 12, kind: output, shape index: {}]  }
   0x1   :  { %17 = sst [smem:[#allocation2]] %s1769_s0 }
   0x2   :  { %18 = sst [smem:[#allocation3]] %s1770_s1 }
   0x3   :  { %s1453_s25 = smov 0   ;;  %s1455_s26 = smov 0  }
   0x4   :  { %s1457_s27 = smov 0  }
   0x5 LB: > { %s1275_s0 = sadd.s32 4294967295, %s1379_s27   ;;  %s1470_s1 = sadd.s32 1, %s1379_s27   ;;  %s1379_s27 = sphi %s1457_s27, %s1785_s27   ;;  %s1375_s26 = sphi %s1455_s26, %s1784_s26   ;;  %s1371_s25 = sphi %s1453_s25, %s1783_s25  }
   0x6   : > { %s70_s28 = ssub.s32 %s1379_s27, %s1470_s1  ;;  %s73_s29 = sadd.s32 1, %s1375_s26 }
   0x7   : > { %p71_p0 = scmp.eq.s32.totalorder %s70_s28, 0  ;;  %p80_p1 = scmp.ne.s32.totalorder %s1375_s26, %s1371_s25 }
   0x8   : > { %p81_p2 = scmp.eq.s32.totalorder %s1379_s27, 0  ;;  %p299_p3 = scmp.eq.s32.totalorder %s1275_s0, 1 }
   0x9   : > { %s1481_s30 = scalar_select %p71_p0, %s1375_s26, %s73_s29  }
   0xa   : > { %p82_p4 = por %p81_p2, %p80_p1  ;;  %p1483_p5 = por %p299_p3, %p80_p1 }
   0xb   : > { %p1278_p6 = scmp.ge.s32.totalorder %s1379_s27, 2 }
   0xd   : > { %354 = sbr.rel (%p1278_p6) target bundleno = 24 (0x18), region = 60 }
  0x12   : > { %357 = sbr.rel (!%p82_p4) target bundleno = 24 (0x18), region = 64  ;;  %s359_s14 = sand.u32 (%p82_p4), 1, %s1375_s26  }
  0x13   : > { %s1318_s15 = sshll.u32 (%p82_p4), %s1379_s27, 4  ;;  %s1279_s16 = sshll.u32 (%p82_p4), %s359_s14, 5 }
  0x14   : > { %s364_s19 = scalar_lea.vmem (%p82_p4), %s1771_s2, %s1318_s15  ;;  %s361_s20 = scalar_lea.vmem (%p82_p4), [#allocation4], %s1279_s16 }
  0x15   : > { %v377_v0 = vld [vmem:[%s364_s19] sm:$0xff] (%p82_p4)  ;;  %v379_v1 = vld [vmem:[%s364_s19 + $0x8] sm:$0xff] (%p82_p4) }
  0x16   : > { %v381_v2 = vld [vmem:[%s364_s19 + $0x20] sm:$0xff] (%p82_p4)  ;;  %378 = vst [vmem:[%s361_s20] sm:$0xff] (%p82_p4), %v377_v0  ;;  %380 = vst [vmem:[%s361_s20 + $0x8] sm:$0xff] (%p82_p4), %v379_v1  ;;  %v383_v3 = vld [vmem:[%s364_s19 + $0x28] sm:$0xff] (%p82_p4) }
  0x17   : > { %382 = vst [vmem:[%s361_s20 + $0x10] sm:$0xff] %v381_v2  ;;  %384 = vst [vmem:[%s361_s20 + $0x18] sm:$0xff] %v383_v3 }
  0x18 PF: > { %p1282_p7 = scmp.ge.s32.totalorder %s1379_s27, 1  ;;  %p389_p8 = scmp.lt.s32.totalorder %s1379_s27, 3 }
  0x1a   : > { %p390_p9 = pnand %p1282_p7, %p389_p8 }
  0x1b   : > { %s396_s21 = sand.u32 (!%p390_p9), 1, %s1371_s25   ;;  %s440_s23 = sld [smem:[#allocation3]] (!%p390_p9) }
  0x1c   : > { %393 = sbr.rel (%p390_p9) target bundleno = 1610 (0x64a), region = 87  ;;  %s1496_s22 = sshll.u32 (!%p390_p9), %s396_s21, 5 }
  0x1d   : > { %s398_s25 = scalar_lea.vmem (!%p390_p9), [#allocation4], %s1496_s22  ;;  %s439_s24 = sld [smem:[#allocation2]] (!%p390_p9) }
  0x1e   : > { %s435_s17 = scalar_lea.vmem (!%p390_p9), [#allocation5], %s1496_s22 }
  0x21   : > { %v1381_v4 = vmov 0   ;;  %v563_v5 = vld [vmem:[%s1773_s4 + $0x10] sm:$0xff]  ;;  %v561_v6 = vld [vmem:[%s1773_s4] sm:$0xff]  ;;  %v442_v7 = vld [vmem:[%s398_s25 + $0x8] sm:$0xff]  ;;  %vm475_vm0 = vcmask 130048   ;;  %vm643_vm1 = vcmask 261120  }
  0x22   : > { %520 = vmatprep.mubr.bf16.mxu0 %v1381_v4  ;;  %1345 = vset.pattern.permute.xlu0 %v1381_v4  ;;  %v444_v8 = vld [vmem:[%s398_s25 + $0x18] sm:$0xff]  ;;  %v441_v9 = vld [vmem:[%s398_s25] sm:$0xff]  ;;  %v443_v11 = vld [vmem:[%s398_s25 + $0x10] sm:$0xff]  ;;  %s1319_s18 = sshll.u32 (%p1483_p5), %s1275_s0, 4 }
  0x23   : > { %1346 = vset.pattern.permute.xlu1 %v1381_v4  ;;  %682 = vmatprep.mubr.bf16.mxu1 %v1381_v4  ;;  %v446_v10 = vpack.c.bf16 %v444_v8, %v442_v7  ;;  %v564_v12 = vld [vmem:[%s1773_s4 + $0x18] sm:$0xff]  ;;  %v445_v13 = vpack.c.bf16 %v443_v11, %v441_v9  ;;  %v562_v14 = vld [vmem:[%s1773_s4 + $0x8] sm:$0xff]  ;;  %v1347_v15 = vld [vmem:[%s1772_s3] sm:$0xff]   ;;  %s1195_s20 = scalar_lea.vmem (%p1483_p5), %s1781_s12, %s1319_s18 }
  0x24   : > { %577 = vperm.xlu0 %1345, %v563_v5   ;;  %567 = vperm.xlu1 %1346, %v561_v6   ;;  %v611_v16 = vld [vmem:[%s1775_s6 + $0x10] sm:$0xff]  ;;  %v612_v17 = vld [vmem:[%s1775_s6 + $0x18] sm:$0xff]  ;;  %v609_v18 = vld [vmem:[%s1775_s6] sm:$0xff] }
  0x25   : > { %502 = vmatprep.subr.bf16.mxu0 %v446_v10  ;;  %v610_v19 = vld [vmem:[%s1775_s6 + $0x8] sm:$0xff]  ;;  %v717_v21 = vld [vmem:[%s1777_s8] sm:$0xff]  ;;  %v1352_v59 = vld [vmem:[%s1772_s3 + $0x10] sm:$0xff]  }
  0x26   : > { %503 = vmatpush1.bf16.msra.mxu0 %v445_v13  ;;  %v1348_v20 = vld [vmem:[%s1772_s3 + $0x8] sm:$0xff]   ;;  %v784_v23 = vld [vmem:[%s1778_s9] sm:$0xff]  ;;  %v1353_v60 = vld [vmem:[%s1772_s3 + $0x18] sm:$0xff]  }
  0x27   : > { %v718_v22 = vld [vmem:[%s1777_s8 + $0x8] sm:$0xff]  ;;  %v1349_v57 = vld [vmem:[%s1774_s5] sm:$0xff]  }
  0x28   : > { %582 = vperm.xlu0 %1345, %v564_v12   ;;  %572 = vperm.xlu1 %1346, %v562_v14   ;;  %v785_v24 = vld [vmem:[%s1778_s9 + $0x8] sm:$0xff] }
  0x29   : > { %1289 = vmatmul.mubr.msk.bf16.vlgmr.msra.gmra.mxu0 %vm475_vm0, %v1347_v15  ;;  %v1350_v58 = vld [vmem:[%s1774_s5 + $0x8] sm:$0xff]  }
  0x2a   : > { %530 = vmatprep.mubr.bf16.mxu0 %v1381_v4 }
  0x2c   : > { %625 = vperm.xlu0 %1345, %v611_v16   ;;  %630 = vperm.xlu1 %1346, %v612_v17  }
  0x30   : > { %615 = vperm.xlu0 %1345, %v609_v18   ;;  %620 = vperm.xlu1 %1346, %v610_v19  }
  0x31   : > { %1290 = vmatmul.mubr.msk.bf16.gmra.mxu0 %vm475_vm0, %v1348_v20 }
  0x32   : > { %540 = vmatprep.mubr.bf16.mxu0 %v1381_v4 }
  0x34   : > { %721 = vperm.xlu0 %1345, %v717_v21   ;;  %726 = vperm.xlu1 %1346, %v718_v22  }
  0x38   : > { %788 = vperm.xlu0 %1345, %v784_v23   ;;  %793 = vperm.xlu1 %1346, %v785_v24  }
  0x39   : > { %1291 = vmatmul.mubr.msk.bf16.gmra.mxu0 %vm475_vm0, %v1352_v59 }
  0x3a   : > { %550 = vmatprep.mubr.bf16.mxu0 %v1381_v4 }
  0x41   : > { %1292 = vmatmul.mubr.msk.bf16.gmra.mxu0 %vm475_vm0, %v1353_v60 }
  0x42   : > { %991 = vmatprep.mubr.bf16.mxu0 %v1381_v4 }
  0x9f   : > { %v578_v28 = vpop.permute.xlu0 %577  ;;  %v568_v29 = vpop.permute.xlu1 %567 }
  0xa3   : > { %v583_v33 = vpop.permute.xlu0 %582  ;;  %v573_v34 = vpop.permute.xlu1 %572 }
  0xa7   : > { %v631_v0 = vpop.permute.xlu1 %630  ;;  %v626_v2 = vpop.permute.xlu0 %625 }
  0xab   : > { %v621_v6 = vpop.permute.xlu1 %620  ;;  %v616_v11 = vpop.permute.xlu0 %615 }
  0xe9   : > { %v522_v25 = vpop.f32.mrf.mxu0 }
  0xea   : > { %v585_v48 = vadd.f32 %v568_v29, %v522_v25 }
  0xeb   : > { %v524_v26 = vpop.f32.mrf.mxu0 }
  0xec   : > { %v586_v41 = vadd.f32 %v568_v29, %v524_v26  ;;  %v593_v55 = vmax.f32 %v585_v48, 0.0 }
  0xed   : > { %v526_v27 = vpop.f32.mrf.mxu0 }
  0xee   : > { %v587_v43 = vadd.f32 %v573_v34, %v526_v27  ;;  %v594_v50 = vmax.f32 %v586_v41, 0.0 }
  0xef   : > { %v528_v30 = vpop.f32.mrf.mxu0 }
  0xf0   : > { %v588_v36 = vadd.f32 %v573_v34, %v528_v30  ;;  %v595_v52 = vmax.f32 %v587_v43, 0.0  ;;  %v1351_v30 = vld [vmem:[%s1776_s7] sm:$0xff]   ;;  %v727_v34 = vpop.permute.xlu1 %726 }
  0xf1   : > { %v532_v31 = vpop.f32.mrf.mxu0 }
  0xf2   : > { %v589_v39 = vadd.f32 %v578_v28, %v532_v31  ;;  %v596_v45 = vmax.f32 %v588_v36, 0.0  ;;  %v605_v56 = vpack.c.bf16 %v595_v52, %v593_v55  ;;  %v722_v31 = vpop.permute.xlu0 %721 }
  0xf3   : > { %v534_v32 = vpop.f32.mrf.mxu0 }
  0xf4   : > { %v590_v37 = vadd.f32 %v578_v28, %v534_v32  ;;  %v597_v49 = vmax.f32 %v589_v39, 0.0  ;;  %v606_v54 = vpack.c.bf16 %v596_v45, %v594_v50 }
  0xf5   : > { %v536_v35 = vpop.f32.mrf.mxu0 }
  0xf6   : > { %v591_v38 = vadd.f32 %v583_v33, %v536_v35  ;;  %v598_v46 = vmax.f32 %v590_v37, 0.0  ;;  %v789_v45 = vpop.permute.xlu0 %788 }
  0xf7   : > { %v538_v40 = vpop.f32.mrf.mxu0 }
  0xf8   : > { %v592_v42 = vadd.f32 %v583_v33, %v538_v40  ;;  %v599_v44 = vmax.f32 %v591_v38, 0.0 }
  0xf9   : > { %v1574_v40 = vpop.f32.mrf.mxu0 }
  0xfa   : > { %v600_v47 = vmax.f32 %v592_v42, 0.0  ;;  %v607_v53 = vpack.c.bf16 %v599_v44, %v597_v49 }
  0xfb   : > { %v1576_v50 = vpop.f32.mrf.mxu0 }
  0xfc   : > { %v608_v51 = vpack.c.bf16 %v600_v47, %v598_v46  ;;  %v794_v46 = vpop.permute.xlu1 %793 }
  0xfe   : > { %662 = vmatprep.subr.bf16.mxu1 %v608_v51 }
  0xff   : > { %663 = vmatpush1.bf16.msra.mxu1 %v607_v53 }
 0x100   : > { %664 = vmatprep.subr.bf16.mxu1 %v606_v54 }
 0x103   : > { %665 = vmatpush1.bf16.msra.mxu1 %v605_v56  ;;  %v1578_v56 = vpop.f32.mrf.mxu0 }
 0x106   : > { %1295 = vmatmul.mubr.msk.bf16.vlgmr.msra.gmra.mxu1 %vm643_vm1, %v1349_v57 }
 0x107   : > { %692 = vmatprep.mubr.bf16.mxu1 %v1381_v4 }
 0x10e   : > { %1296 = vmatmul.mubr.msk.bf16.gmra.mxu1 %vm643_vm1, %v1350_v58 }
 0x10f   : > { %769 = vmatprep.mubr.bf16.mxu1 %v1381_v4 }
 0x1c6   : > { %v684_v61 = vpop.f32.mrf.mxu1 }
 0x1c7   : > { %v685_v21 = vadd.f32 %v684_v61, %v616_v11  ;;  %v1580_v61 = vpop.f32.mrf.mxu0 }
 0x1c8   : > { %v686_v62 = vpop.f32.mrf.mxu1 }
 0x1c9   : > { %v687_v14 = vadd.f32 %v686_v62, %v616_v11  ;;  %v703_v28 = vmax.f32 %v685_v21, 0.0 }
 0x1ca   : > { %v688_v63 = vpop.f32.mrf.mxu1 }
 0x1cb   : > { %v689_v16 = vadd.f32 %v688_v63, %v621_v6  ;;  %v704_v23 = vmax.f32 %v687_v14, 0.0 }
 0x1cc   : > { %v690_v1 = vpop.f32.mrf.mxu1 }
 0x1cd   : > { %v691_v8 = vadd.f32 %v690_v1, %v621_v6  ;;  %v705_v25 = vmax.f32 %v689_v16, 0.0 }
 0x1ce   : > { %v694_v3 = vpop.f32.mrf.mxu1 }
 0x1cf   : > { %v695_v12 = vadd.f32 %v694_v3, %v626_v2  ;;  %v706_v18 = vmax.f32 %v691_v8, 0.0  ;;  %v713_v29 = vpack.c.bf16 %v705_v25, %v703_v28  ;;  %v814_v3 = vstv %s440_s23 }
 0x1d0   : > { %v696_v5 = vpop.f32.mrf.mxu1 }
 0x1d1   : > { %v697_v9 = vadd.f32 %v696_v5, %v626_v2  ;;  %v707_v22 = vmax.f32 %v695_v12, 0.0  ;;  %v714_v27 = vpack.c.bf16 %v706_v18, %v704_v23  ;;  %v552_v2 = vpop.f32.mrf.mxu0 }
 0x1d2   : > { %v698_v7 = vpop.f32.mrf.mxu1 }
 0x1d3   : > { %v699_v10 = vadd.f32 %v698_v7, %v631_v0  ;;  %v708_v19 = vmax.f32 %v697_v9, 0.0  ;;  %v554_v9 = vpop.f32.mrf.mxu0 }
 0x1d4   : > { %v700_v13 = vpop.f32.mrf.mxu1 }
 0x1d5   : > { %v701_v15 = vadd.f32 %v700_v13, %v631_v0  ;;  %v709_v17 = vmax.f32 %v699_v10, 0.0  ;;  %v1582_v10 = vstv %s439_s24 }
 0x1d7   : > { %v710_v20 = vmax.f32 %v701_v15, 0.0  ;;  %v715_v26 = vpack.c.bf16 %v709_v17, %v707_v22  ;;  %v556_v15 = vpop.f32.mrf.mxu0 }
 0x1d9   : > { %v716_v24 = vpack.c.bf16 %v710_v20, %v708_v19  ;;  %v558_v23 = vpop.f32.mrf.mxu0 }
 0x1db   : > { %749 = vmatprep.subr.bf16.mxu1 %v716_v24 }
 0x1dc   : > { %750 = vmatpush1.bf16.msra.mxu1 %v715_v26 }
 0x1dd   : > { %751 = vmatprep.subr.bf16.mxu1 %v714_v27 }
 0x1e0   : > { %752 = vmatpush1.bf16.msra.mxu1 %v713_v29 }
 0x1e3   : > { %1298 = vmatmul.mubr.msk.bf16.vlgmr.msra.gmra.mxu1 %vm643_vm1, %v1351_v30 }
 0x1e4   : > { %910 = vmatprep.mubr.bf16.mxu1 %v1381_v4 }
 0x2a3   : > { %v771_v32 = vpop.f32.mrf.mxu1 }
 0x2a4   : > { %v772_v33 = vadd.f32 %v771_v32, %v722_v31 }
 0x2a5   : > { %v773_v35 = vpop.f32.mrf.mxu1 }
 0x2a6   : > { %v774_v36 = vadd.f32 %v773_v35, %v722_v31  ;;  %v780_v38 = vmax.f32 %v772_v33, 0.0 }
 0x2a7   : > { %v775_v37 = vpop.f32.mrf.mxu1 }
 0x2a8   : > { %v776_v39 = vadd.f32 %v775_v37, %v727_v34  ;;  %v781_v42 = vmax.f32 %v774_v36, 0.0  ;;  %v796_v47 = vmul.f32 %v789_v45, %v780_v38 }
 0x2a9   : > { %v777_v41 = vpop.f32.mrf.mxu1 }
 0x2aa   : > { %v782_v43 = vmax.f32 %v776_v39, 0.0  ;;  %v778_v44 = vadd.f32 %v777_v41, %v727_v34  ;;  %v797_v51 = vmul.f32 %v789_v45, %v781_v42 }
 0x2ac   : > { %v798_v48 = vmul.f32 %v794_v46, %v782_v43  ;;  %v783_v49 = vmax.f32 %v778_v44, 0.0 }
 0x2ae   : > { %v800_v52 = vadd.f32 %v798_v48, %v796_v47  ;;  %v799_v53 = vmul.f32 %v794_v46, %v783_v49  ;;  %v1623_v47 = vld [vmem:[%s1780_s11] sm:$0xff]   ;;  %v1631_v48 = vld [vmem:[%s1780_s11 + $0x8] sm:$0xff]  }
 0x2b0   : > { %v801_v54 = vrot.slane %v800_v52, 4  ;;  %v807_v55 = vadd.f32 %v799_v53, %v797_v51 }
 0x2b2   : > { %v802_v57 = vadd.f32 %v801_v54, %v800_v52  ;;  %v808_v58 = vrot.slane %v807_v55, 4  ;;  %v1638_v54 = vmul.f32 %v1582_v10, %v1580_v61 }
 0x2b4   : > { %v803_v59 = vrot.slane %v802_v57, 2  ;;  %v809_v60 = vadd.f32 %v808_v58, %v807_v55  ;;  %v1641_v55 = vmul.f32 %v1582_v10, %v552_v2  ;;  %v1645_v58 = vmul.f32 %v1582_v10, %v1576_v50 }
 0x2b6   : > { %v804_v62 = vadd.f32 %v803_v59, %v802_v57  ;;  %v810_v63 = vrot.slane %v809_v60, 2  ;;  %v1648_v59 = vmul.f32 %v1582_v10, %v554_v9 }
 0x2b8   : > { %v805_v0 = vrot.slane %v804_v62, 1  ;;  %v811_v1 = vadd.f32 %v810_v63, %v809_v60 }
 0x2ba   : > { %v806_v5 = vadd.f32 %v805_v0, %v804_v62  ;;  %v812_v6 = vrot.slane %v811_v1, 1  ;;  %v1653_v62 = vmul.f32 %v1582_v10, %v1578_v56 }
 0x2bc   : > { %v815_v7 = vadd.f32 %v814_v3, %v806_v5  ;;  %v813_v8 = vadd.f32 %v812_v6, %v811_v1 }
 0x2be   : > { %v1585_v11 = vmul.f32 %v1582_v10, %v815_v7  ;;  %v816_v12 = vadd.f32 %v814_v3, %v813_v8 }
 0x2c0   : > { %v1588_v13 = vmul.f32 %v1582_v10, %v816_v12  ;;  %v1591_v14 = vsub.f32 0.0, %v1585_v11 }
 0x2c2   : > { %v1594_v16 = vsub.f32 0.0, %v1588_v13  ;;  %v834_v17 = vmax.f32 %v1591_v14, %v552_v2  ;;  %v836_v18 = vmax.f32 %v1591_v14, %v556_v15  ;;  %v830_v19 = vmax.f32 %v1591_v14, %v1574_v40 }
 0x2c3   : > { %v832_v21 = vmax.f32 %v1591_v14, %v1578_v56 }
 0x2c4   : > { %v831_v20 = vmax.f32 %v1594_v16, %v1576_v50  ;;  %v833_v22 = vmax.f32 %v1594_v16, %v1580_v61  ;;  %v842_v24 = vmin.f32 %v1585_v11, %v834_v17  ;;  %v835_v25 = vmax.f32 %v1594_v16, %v554_v9 }
 0x2c5   : > { %v844_v26 = vmin.f32 %v1585_v11, %v836_v18  ;;  %v837_v27 = vmax.f32 %v1594_v16, %v558_v23  ;;  %v838_v32 = vmin.f32 %v1585_v11, %v830_v19  ;;  %v840_v33 = vmin.f32 %v1585_v11, %v832_v21 }
 0x2c6   : > { %v839_v28 = vmin.f32 %v1588_v13, %v831_v20  ;;  %v841_v29 = vmin.f32 %v1588_v13, %v833_v22  ;;  %v843_v30 = vmin.f32 %v1588_v13, %v835_v25  ;;  %v850_v34 = vsub.f32 %v552_v2, %v842_v24 }
 0x2c7   : > { %v845_v31 = vmin.f32 %v1588_v13, %v837_v27  ;;  %v852_v35 = vsub.f32 %v556_v15, %v844_v26  ;;  %v846_v42 = vsub.f32 %v1574_v40, %v838_v32  ;;  %v848_v43 = vsub.f32 %v1578_v56, %v840_v33 }
 0x2c8   : > { %v847_v36 = vsub.f32 %v1576_v50, %v839_v28  ;;  %v849_v37 = vsub.f32 %v1580_v61, %v841_v29  ;;  %v851_v38 = vsub.f32 %v554_v9, %v843_v30  ;;  %v1660_v50 = vmul.f32 %v1582_v10, %v1574_v40 }
 0x2c9   : > { %v853_v39 = vsub.f32 %v558_v23, %v845_v31  ;;  %v860_v44 = vpack.c.bf16 %v852_v35, %v850_v34  ;;  %v858_v46 = vpack.c.bf16 %v848_v43, %v846_v42  ;;  %v1663_v2 = vmul.f32 %v1582_v10, %v556_v15 }
 0x2ca   : > { %v859_v45 = vpack.c.bf16 %v849_v37, %v847_v36  ;;  %v1667_v56 = vmul.f32 %v1582_v10, %v558_v23 }
 0x2cb   : > { %v861_v41 = vpack.c.bf16 %v853_v39, %v851_v38 }
 0x2cd   : > { %890 = vmatprep.subr.bf16.mxu1 %v861_v41 }
 0x2ce   : > { %891 = vmatpush1.bf16.msra.mxu1 %v860_v44 }
 0x2cf   : > { %892 = vmatprep.subr.bf16.mxu1 %v859_v45 }
 0x2d2   : > { %893 = vmatpush1.bf16.msra.mxu1 %v858_v46 }
 0x2d5   : > { %1301 = vmatmul.mubr.msk.bf16.vlgmr.msra.gmra.mxu1 %vm643_vm1, %v1623_v47 }
 0x2d6   : > { %920 = vmatprep.mubr.bf16.mxu1 %v1381_v4 }
 0x2dd   : > { %1302 = vmatmul.mubr.msk.bf16.gmra.mxu1 %vm643_vm1, %v1631_v48 }
 0x2de   : > { %1072 = vmatprep.mubr.bf16.mxu1 %v1381_v4 }
 0x395   : > { %v912_v49 = vpop.f32.mrf.mxu1 }
 0x396   : > { %v913_v8 = vadd.f32 %v912_v49, %v1660_v50 }
 0x397   : > { %v914_v51 = vpop.f32.mrf.mxu1 }
 0x398   : > { %v915_v0 = vadd.f32 %v914_v51, %v1645_v58  ;;  %v931_v22 = vmax.f32 %v1591_v14, %v913_v8 }
 0x399   : > { %v916_v52 = vpop.f32.mrf.mxu1 }
 0x39a   : > { %v917_v3 = vadd.f32 %v916_v52, %v1653_v62  ;;  %v932_v15 = vmax.f32 %v1594_v16, %v915_v0  ;;  %v939_v32 = vmin.f32 %v1585_v11, %v931_v22 }
 0x39b   : > { %v918_v53 = vpop.f32.mrf.mxu1 }
 0x39c   : > { %v919_v60 = vadd.f32 %v918_v53, %v1638_v54  ;;  %v933_v18 = vmax.f32 %v1591_v14, %v917_v3  ;;  %v940_v25 = vmin.f32 %v1588_v13, %v932_v15  ;;  %v947_v39 = vsub.f32 %v913_v8, %v939_v32 }
 0x39d   : > { %v922_v57 = vpop.f32.mrf.mxu1 }
 0x39e   : > { %v923_v61 = vadd.f32 %v922_v57, %v1641_v55  ;;  %v934_v6 = vmax.f32 %v1594_v16, %v919_v60  ;;  %v941_v27 = vmin.f32 %v1585_v11, %v933_v18  ;;  %v948_v34 = vsub.f32 %v915_v0, %v940_v25 }
 0x39f   : > { %v924_v63 = vpop.f32.mrf.mxu1 }
 0x3a0   : > { %v925_v1 = vadd.f32 %v924_v63, %v1648_v59  ;;  %v935_v9 = vmax.f32 %v1591_v14, %v923_v61  ;;  %v942_v19 = vmin.f32 %v1588_v13, %v934_v6  ;;  %v949_v36 = vsub.f32 %v917_v3, %v941_v27 }
 0x3a1   : > { %v926_v5 = vpop.f32.mrf.mxu1 }
 0x3a2   : > { %v936_v7 = vmax.f32 %v1594_v16, %v925_v1  ;;  %v927_v40 = vadd.f32 %v926_v5, %v1663_v2  ;;  %v943_v23 = vmin.f32 %v1585_v11, %v935_v9  ;;  %v950_v29 = vsub.f32 %v919_v60, %v942_v19 }
 0x3a3   : > { %v928_v12 = vpop.f32.mrf.mxu1  ;;  %v955_v41 = vpack.c.bf16 %v949_v36, %v947_v39 }
 0x3a4   : > { %v929_v17 = vadd.f32 %v928_v12, %v1667_v56  ;;  %v937_v10 = vmax.f32 %v1591_v14, %v927_v40  ;;  %v944_v20 = vmin.f32 %v1588_v13, %v936_v7  ;;  %v951_v33 = vsub.f32 %v923_v61, %v943_v23 }
 0x3a5   : > { %v956_v38 = vpack.c.bf16 %v950_v29, %v948_v34 }
 0x3a6   : > { %v938_v21 = vmax.f32 %v1594_v16, %v929_v17  ;;  %v945_v24 = vmin.f32 %v1585_v11, %v937_v10  ;;  %v952_v30 = vsub.f32 %v925_v1, %v944_v20 }
 0x3a8   : > { %v946_v26 = vmin.f32 %v1588_v13, %v938_v21  ;;  %v953_v28 = vsub.f32 %v927_v40, %v945_v24 }
 0x3aa   : > { %v954_v31 = vsub.f32 %v929_v17, %v946_v26  ;;  %v957_v37 = vpack.c.bf16 %v953_v28, %v951_v33 }
 0x3ac   : > { %v958_v35 = vpack.c.bf16 %v954_v31, %v952_v30 }
 0x3ae   : > { %971 = vmatprep.subr.bf16.mxu0 %v958_v35 }
 0x3af   : > { %972 = vmatpush1.bf16.msra.mxu0 %v957_v37 }
 0x3b0   : > { %973 = vmatprep.subr.bf16.mxu0 %v956_v38 }
 0x3b3   : > { %974 = vmatpush1.bf16.msra.mxu0 %v955_v41 }
 0x3b6   : > { %1303 = vmatmul.mubr.msk.bf16.vlgmr.msra.gmra.mxu0 %vm643_vm1, %v1623_v47 }
 0x3b7   : > { %1001 = vmatprep.mubr.bf16.mxu0 %v1381_v4 }
 0x3be   : > { %1304 = vmatmul.mubr.msk.bf16.gmra.mxu0 %vm643_vm1, %v1631_v48 }
 0x3bf   : > { %1163 = vmatprep.mubr.bf16.mxu0 %v1381_v4 }
 0x476   : > { %v993_v42 = vpop.f32.mrf.mxu0 }
 0x477   : > { %v994_v1 = vadd.f32 %v993_v42, %v1660_v50 }
 0x478   : > { %v995_v43 = vpop.f32.mrf.mxu0 }
 0x479   : > { %v996_v53 = vadd.f32 %v995_v43, %v1645_v58  ;;  %v1012_v18 = vmax.f32 %v1591_v14, %v994_v1 }
 0x47a   : > { %v997_v44 = vpop.f32.mrf.mxu0 }
 0x47b   : > { %v998_v60 = vadd.f32 %v997_v44, %v1653_v62  ;;  %v1013_v7 = vmax.f32 %v1594_v16, %v996_v53  ;;  %v1020_v27 = vmin.f32 %v1585_v11, %v1012_v18  ;;  %v1356_v18 = vld [vmem:[%s1779_s10] sm:$0xff]  }
 0x47c   : > { %v999_v45 = vpop.f32.mrf.mxu0 }
 0x47d   : > { %v1000_v49 = vadd.f32 %v999_v45, %v1638_v54  ;;  %v1014_v9 = vmax.f32 %v1591_v14, %v998_v60  ;;  %v1021_v20 = vmin.f32 %v1588_v13, %v1013_v7  ;;  %v1028_v34 = vsub.f32 %v994_v1, %v1020_v27 }
 0x47e   : > { %v1003_v46 = vpop.f32.mrf.mxu0 }
 0x47f   : > { %v1004_v51 = vadd.f32 %v1003_v46, %v1641_v55  ;;  %v1015_v63 = vmax.f32 %v1594_v16, %v1000_v49  ;;  %v1022_v22 = vmin.f32 %v1585_v11, %v1014_v9  ;;  %v1029_v29 = vsub.f32 %v996_v53, %v1021_v20 }
 0x480   : > { %v1005_v52 = vpop.f32.mrf.mxu0 }
 0x481   : > { %v1006_v57 = vadd.f32 %v1005_v52, %v1648_v59  ;;  %v1016_v3 = vmax.f32 %v1591_v14, %v1004_v51  ;;  %v1023_v12 = vmin.f32 %v1588_v13, %v1015_v63  ;;  %v1030_v31 = vsub.f32 %v998_v60, %v1022_v22 }
 0x482   : > { %v1007_v61 = vpop.f32.mrf.mxu0 }
 0x483   : > { %v1017_v0 = vmax.f32 %v1594_v16, %v1006_v57  ;;  %v1008_v5 = vadd.f32 %v1007_v61, %v1663_v2  ;;  %v1024_v10 = vmin.f32 %v1585_v11, %v1016_v3  ;;  %v1031_v24 = vsub.f32 %v1000_v49, %v1023_v12 }
 0x484   : > { %v1009_v6 = vpop.f32.mrf.mxu0  ;;  %v1036_v35 = vpack.c.bf16 %v1030_v31, %v1028_v34 }
 0x485   : > { %v1010_v8 = vadd.f32 %v1009_v6, %v1667_v56  ;;  %v1018_v40 = vmax.f32 %v1591_v14, %v1008_v5  ;;  %v1025_v15 = vmin.f32 %v1588_v13, %v1017_v0  ;;  %v1032_v28 = vsub.f32 %v1004_v51, %v1024_v10 }
 0x486   : > { %v1037_v33 = vpack.c.bf16 %v1031_v24, %v1029_v29 }
 0x487   : > { %v1019_v17 = vmax.f32 %v1594_v16, %v1010_v8  ;;  %v1026_v19 = vmin.f32 %v1585_v11, %v1018_v40  ;;  %v1033_v25 = vsub.f32 %v1006_v57, %v1025_v15 }
 0x489   : > { %v1027_v21 = vmin.f32 %v1588_v13, %v1019_v17  ;;  %v1034_v23 = vsub.f32 %v1008_v5, %v1026_v19 }
 0x48b   : > { %v1035_v26 = vsub.f32 %v1010_v8, %v1027_v21  ;;  %v1038_v32 = vpack.c.bf16 %v1034_v23, %v1032_v28 }
 0x48d   : > { %v1039_v30 = vpack.c.bf16 %v1035_v26, %v1033_v25 }
 0x48f   : > { %1052 = vmatprep.subr.bf16.mxu1 %v1039_v30 }
 0x490   : > { %1053 = vmatpush1.bf16.msra.mxu1 %v1038_v32 }
 0x491   : > { %1054 = vmatprep.subr.bf16.mxu1 %v1037_v33 }
 0x494   : > { %1055 = vmatpush1.bf16.msra.mxu1 %v1036_v35 }
 0x497   : > { %1305 = vmatmul.mubr.msk.bf16.vlgmr.msra.gmra.mxu1 %vm643_vm1, %v1623_v47 }
 0x498   : > { %1082 = vmatprep.mubr.bf16.mxu1 %v1381_v4 }
 0x49f   : > { %1306 = vmatmul.mubr.msk.bf16.gmra.mxu1 %vm643_vm1, %v1631_v48 }
 0x557   : > { %v1074_v36 = vpop.f32.mrf.mxu1 }
 0x558   : > { %v1075_v51 = vadd.f32 %v1074_v36, %v1660_v50 }
 0x559   : > { %v1076_v37 = vpop.f32.mrf.mxu1 }
 0x55a   : > { %v1077_v45 = vadd.f32 %v1076_v37, %v1645_v58  ;;  %v1093_v50 = vmax.f32 %v1591_v14, %v1075_v51 }
 0x55b   : > { %v1078_v38 = vpop.f32.mrf.mxu1 }
 0x55c   : > { %v1079_v47 = vadd.f32 %v1078_v38, %v1653_v62  ;;  %v1101_v8 = vmin.f32 %v1585_v11, %v1093_v50 }
 0x55d   : > { %v1080_v39 = vpop.f32.mrf.mxu1 }
 0x55e   : > { %v1081_v42 = vadd.f32 %v1080_v39, %v1638_v54  ;;  %v1109_v17 = vsub.f32 %v1075_v51, %v1101_v8 }
 0x55f   : > { %v1084_v41 = vpop.f32.mrf.mxu1 }
 0x560   : > { %v1085_v43 = vadd.f32 %v1084_v41, %v1641_v55  ;;  %v1096_v49 = vmax.f32 %v1594_v16, %v1081_v42  ;;  %v1094_v55 = vmax.f32 %v1594_v16, %v1077_v45 }
 0x561   : > { %v1086_v44 = vpop.f32.mrf.mxu1 }
 0x562   : > { %v1087_v46 = vadd.f32 %v1086_v44, %v1648_v59  ;;  %v1097_v52 = vmax.f32 %v1591_v14, %v1085_v43  ;;  %v1095_v59 = vmax.f32 %v1591_v14, %v1079_v47  ;;  %v1104_v57 = vmin.f32 %v1588_v13, %v1096_v49 }
 0x563   : > { %v1088_v4 = vpop.f32.mrf.mxu1  ;;  %v1102_v0 = vmin.f32 %v1588_v13, %v1094_v55 }
 0x564   : > { %v1098_v48 = vmax.f32 %v1594_v16, %v1087_v46  ;;  %v1089_v54 = vadd.f32 %v1088_v4, %v1663_v2  ;;  %v1105_v63 = vmin.f32 %v1585_v11, %v1097_v52  ;;  %v1103_v1 = vmin.f32 %v1585_v11, %v1095_v59 }
 0x565   : > { %v1090_v53 = vpop.f32.mrf.mxu1  ;;  %v1112_v5 = vsub.f32 %v1081_v42, %v1104_v57 }
 0x566   : > { %v1091_v58 = vadd.f32 %v1090_v53, %v1667_v56  ;;  %v1099_v62 = vmax.f32 %v1591_v14, %v1089_v54  ;;  %v1106_v60 = vmin.f32 %v1588_v13, %v1098_v48  ;;  %v1113_v9 = vsub.f32 %v1085_v43, %v1105_v63 }
 0x567   : > { %v1111_v40 = vsub.f32 %v1079_v47, %v1103_v1 }
 0x568   : > { %v1100_v61 = vmax.f32 %v1594_v16, %v1091_v58  ;;  %v1107_v2 = vmin.f32 %v1585_v11, %v1099_v62  ;;  %v1114_v6 = vsub.f32 %v1087_v46, %v1106_v60  ;;  %v1110_v16 = vsub.f32 %v1077_v45, %v1102_v0 }
 0x56a   : > { %v1108_v56 = vmin.f32 %v1588_v13, %v1100_v61  ;;  %v1115_v3 = vsub.f32 %v1089_v54, %v1107_v2  ;;  %v1120_v15 = vpack.c.bf16 %v1112_v5, %v1110_v16  ;;  %v1119_v13 = vpack.c.bf16 %v1111_v40, %v1109_v17 }
 0x56c   : > { %v1116_v7 = vsub.f32 %v1091_v58, %v1108_v56  ;;  %v1121_v12 = vpack.c.bf16 %v1115_v3, %v1113_v9 }
 0x56e   : > { %v1122_v14 = vpack.c.bf16 %v1116_v7, %v1114_v6 }
 0x570   : > { %1143 = vmatprep.subr.bf16.mxu0 %v1122_v14 }
 0x571   : > { %1144 = vmatpush1.bf16.msra.mxu0 %v1121_v12 }
 0x572   : > { %1145 = vmatprep.subr.bf16.mxu0 %v1120_v15 }
 0x575   : > { %1146 = vmatpush1.bf16.msra.mxu0 %v1119_v13 }
 0x578   : > { %1308 = vmatmul.mubr.msk.bf16.vlgmr.msra.gmra.mxu0 %vm643_vm1, %v1356_v18 }
 0x638   : > { %v1165_v11 = vpop.f32.mrf.mxu0 }
 0x639   : > { %v1309_v10 = vclamps-f32 %v1165_v11, 1.0 }
 0x63a   : > { %v1167_v19 = vpop.f32.mrf.mxu0 }
 0x63b   : > { %1182 = vst [vmem:[%s435_s17] sm:$0xff] %v1309_v10  ;;  %v1310_v20 = vclamps-f32 %v1167_v19, 1.0 }
 0x63c   : > { %v1169_v21 = vpop.f32.mrf.mxu0 }
 0x63d   : > { %1183 = vst [vmem:[%s435_s17 + $0x8] sm:$0xff] %v1310_v20  ;;  %v1311_v22 = vclamps-f32 %v1169_v21, 1.0  ;;  %1192 = sbr.rel (!%p1483_p5) target bundleno = 1610 (0x64a), region = 95 }
 0x63e   : > { %v1171_v23 = vpop.f32.mrf.mxu0 }
 0x63f   : > { %1184 = vst [vmem:[%s435_s17 + $0x10] sm:$0xff] %v1311_v22  ;;  %v1312_v24 = vclamps-f32 %v1171_v23, 1.0 }
 0x641   : > { %1185 = vst [vmem:[%s435_s17 + $0x18] sm:$0xff] %v1312_v24 }
 0x642   : > { %v1208_v25 = vld [vmem:[%s435_s17] sm:$0xff] }
 0x643   : > { %1209 = vst [vmem:[%s1195_s20] sm:$0xff] %v1208_v25 }
 0x644   : > { %v1210_v26 = vld [vmem:[%s435_s17 + $0x8] sm:$0xff] }
 0x645   : > { %1211 = vst [vmem:[%s1195_s20 + $0x8] sm:$0xff] %v1210_v26 }
 0x646   : > { %v1212_v27 = vld [vmem:[%s435_s17 + $0x10] sm:$0xff] }
 0x647   : > { %1213 = vst [vmem:[%s1195_s20 + $0x20] sm:$0xff] %v1212_v27 }
 0x648   : > { %v1214_v28 = vld [vmem:[%s435_s17 + $0x18] sm:$0xff] }
 0x649   : > { %1215 = vst [vmem:[%s1195_s20 + $0x28] sm:$0xff] %v1214_v28 }
 0x64a PF: > { %p21_p10 = scmp.ge.s32.totalorder %s1470_s1, 4   ;;  %s1783_s25 = smov %s1375_s26 }
 0x64b   : > { %s1784_s26 = smov %s1481_s30  ;;  %s1785_s27 = smov %s1470_s1 }
 0x64c   :  { %23 = sbr.rel (!%p21_p10) target bundleno = 5 (0x5), region = 149 }

</bundles_post_ra>
